<compile_context>
chip_gen: v5e
topology: v5e:2x2
jax: 0.10.0
libtpu: 0.0.40
codegen_flags: <defaults>
</compile_context>

<pallas_src>
import functools

import jax
import jax.numpy as jnp
import numpy as np
from jax.experimental import pallas as pl
from jax.experimental.pallas import tpu as pltpu

EPS = 1e-5  # torch BatchNorm1d default eps
F32 = jnp.float32
BF16 = jnp.bfloat16


# ---------------------------------------------------------------------------
# shared math helpers
# ---------------------------------------------------------------------------
def _bn(h, gamma, beta):
    """BatchNorm1d, training mode, biased variance (two-pass / centered)."""
    mean = jnp.mean(h, axis=0, keepdims=True)
    c = h - mean
    var = jnp.mean(c * c, axis=0, keepdims=True)
    scale = gamma * jax.lax.rsqrt(var + EPS)
    return c * scale + beta


def _prelu(h, a):
    return jnp.where(h > 0, h, a * h)


# slab row order (every small vector packed into one f32 parameter slab)
_ROW_ORDER = (
    "enc_b1", "enc_a", "enc_bn_g", "enc_bn_b", "enc_b2",
    "dec_bn1_g", "dec_bn1_b", "dec_b1", "dec_a", "dec_bn2_g", "dec_bn2_b",
    "dec_b2",
    "haz_bn_g", "haz_bn_b", "haz_b",
    "cenc_b", "cdec_bn_g", "cdec_bn_b", "cdec_b",
    "chaz_bn_g", "chaz_bn_b", "chaz_w", "chaz_b",
)


# ---------------------------------------------------------------------------
# fused kernel: block AEs + block hazards + common AE + common hazard
# ---------------------------------------------------------------------------
def _make_kernel(dims, rows):
    nb, Db, H, E, Ec = dims["nb"], dims["Db"], dims["H"], dims["E"], dims["Ec"]
    nbDb, nbH, nbE = nb * Db, nb * H, nb * E
    w_out = dims["w_out"]
    pad_w = w_out - (2 * nbE + nbDb + Ec + 1 + nb)

    def kernel(x_ref, ew1_ref, ew2_ref, dw1_ref, dw2_ref, bhw_ref,
               cew_ref, cdw_ref, slab_ref, o_ref):
        slab = slab_ref[...]

        def row(name, w):
            r = rows[name]
            return slab[r:r + 1, :w]

        x = x_ref[...]                                   # (B, nbDb) bf16

        # --- block encoders: Linear -> PReLU -> BN -> Linear (block-diag) ---
        h = jnp.dot(x, ew1_ref[...],
                    preferred_element_type=F32) + row("enc_b1", nbH)
        h = _prelu(h, row("enc_a", nbH))
        h = _bn(h, row("enc_bn_g", nbH), row("enc_bn_b", nbH))
        z = jnp.dot(h.astype(BF16), ew2_ref[...],
                    preferred_element_type=F32) + row("enc_b2", nbE)
        # z is the lane-packed concat of the per-block embeddings
        # (== original_common)

        # --- block decoders: BN -> Linear -> PReLU -> BN -> Linear ----------
        d = _bn(z, row("dec_bn1_g", nbE), row("dec_bn1_b", nbE))
        d = jnp.dot(d.astype(BF16), dw1_ref[...],
                    preferred_element_type=F32) + row("dec_b1", nbH)
        d = _prelu(d, row("dec_a", nbH))
        d = _bn(d, row("dec_bn2_g", nbH), row("dec_bn2_b", nbH))
        d = jnp.dot(d.astype(BF16), dw2_ref[...],
                    preferred_element_type=F32) + row("dec_b2", nbDb)

        # --- block hazards: per-feature BN + one block-diag (nbE, nb) matmul
        zn = _bn(z, row("haz_bn_g", nbE), row("haz_bn_b", nbE))
        bhaz = jnp.dot(zn.astype(BF16), bhw_ref[...],
                       preferred_element_type=F32) + row("haz_b", nb)

        # --- common AE: encoder Linear; decoder BN -> Linear -----------------
        cz = jnp.dot(z.astype(BF16), cew_ref[...],
                     preferred_element_type=F32) + row("cenc_b", Ec)
        cd = _bn(cz, row("cdec_bn_g", Ec), row("cdec_bn_b", Ec))
        cd = jnp.dot(cd.astype(BF16), cdw_ref[...],
                     preferred_element_type=F32) + row("cdec_b", nbE)

        # --- common hazard: BN -> Linear(Ec, 1) done on the VPU --------------
        czn = _bn(cz, row("chaz_bn_g", Ec), row("chaz_bn_b", Ec))
        chaz = (jnp.sum(czn * row("chaz_w", Ec), axis=-1, keepdims=True)
                + row("chaz_b", 1))

        # --- one lane-dense output slab: [z | cd | d | cz | chaz | bhaz | 0]
        pieces = [z, cd, d, cz, chaz, bhaz]
        if pad_w > 0:
            pieces.append(jnp.zeros((z.shape[0], pad_w), F32))
        o_ref[...] = jnp.concatenate(pieces, axis=-1)

    return kernel


# ---------------------------------------------------------------------------
# wrapper
# ---------------------------------------------------------------------------
def _block_diag(w):
    """(nb, K, N) per-block weights -> (nb*K, nb*N) block-diagonal matrix."""
    nb, K, N = w.shape
    eye = jnp.eye(nb, dtype=w.dtype)
    return jnp.einsum("bkn,bc->bkcn", w, eye).reshape(nb * K, nb * N)


def hierarchical_sae_forward(x, p, blocks):
    """Pallas-backed HierarchicalSAE.forward.

    Returns the same 7-tuple as the PyTorch module:
      (hazard, original_common, decoded, original_blocks,
       blocks_decoded, block_hazards, common_encoded)
    """
    nb = len(blocks)
    B = x.shape[0]
    Db = len(blocks[0])          # equal block sizes assumed (as module config)
    H = p["enc_w1"].shape[-1]
    E = p["enc_w2"].shape[-1]
    Ec = p["cenc_w"].shape[-1]
    nbDb, nbH, nbE = nb * Db, nb * H, nb * E

    # glue: gather the block columns, ship activations already in bf16
    x_packed = jnp.concatenate(
        [x[:, jnp.asarray(block)] for block in blocks], axis=1).astype(BF16)

    # ---- block-diagonal weight packing (one lane-dense matmul per layer) ---
    ew1 = _block_diag(p["enc_w1"]).astype(BF16)   # (nbDb, nbH)
    ew2 = _block_diag(p["enc_w2"]).astype(BF16)   # (nbH,  nbE)
    dw1 = _block_diag(p["dec_w1"]).astype(BF16)   # (nbE,  nbH)
    dw2 = _block_diag(p["dec_w2"]).astype(BF16)   # (nbH,  nbDb)
    bhw = _block_diag(p["haz_w"]).astype(BF16)    # (nbE,  nb)
    cew = p["cenc_w"].astype(BF16)                # (nbE,  Ec)
    cdw = p["cdec_w"].astype(BF16)                # (Ec,   nbE)

    # ---- pack every small vector (bias / BN / PReLU slope) into one slab ---
    vecs = {
        "enc_b1": p["enc_b1"].reshape(-1),
        "enc_a": jnp.broadcast_to(p["enc_a"], (nb, H)).reshape(-1),
        "enc_bn_g": p["enc_bn_g"].reshape(-1),
        "enc_bn_b": p["enc_bn_b"].reshape(-1),
        "enc_b2": p["enc_b2"].reshape(-1),
        "dec_bn1_g": p["dec_bn1_g"].reshape(-1),
        "dec_bn1_b": p["dec_bn1_b"].reshape(-1),
        "dec_b1": p["dec_b1"].reshape(-1),
        "dec_a": jnp.broadcast_to(p["dec_a"], (nb, H)).reshape(-1),
        "dec_bn2_g": p["dec_bn2_g"].reshape(-1),
        "dec_bn2_b": p["dec_bn2_b"].reshape(-1),
        "dec_b2": p["dec_b2"].reshape(-1),
        "haz_bn_g": p["haz_bn_g"].reshape(-1),
        "haz_bn_b": p["haz_bn_b"].reshape(-1),
        "haz_b": p["haz_b"].reshape(-1),
        "cenc_b": p["cenc_b"].reshape(-1),
        "cdec_bn_g": p["cdec_bn_g"].reshape(-1),
        "cdec_bn_b": p["cdec_bn_b"].reshape(-1),
        "cdec_b": p["cdec_b"].reshape(-1),
        "chaz_bn_g": p["chaz_bn_g"].reshape(-1),
        "chaz_bn_b": p["chaz_bn_b"].reshape(-1),
        "chaz_w": p["chaz_w"].reshape(-1),
        "chaz_b": p["chaz_b"].reshape(-1),
    }
    pw = max(int(v.shape[0]) for v in vecs.values())
    slab = jnp.stack(
        [jnp.pad(vecs[name].astype(F32), (0, pw - int(vecs[name].shape[0])))
         for name in _ROW_ORDER], axis=0)                       # (23, pw) f32
    rows = {name: i for i, name in enumerate(_ROW_ORDER)}

    # ---- one lane-dense output slab (padded to a multiple of 128 lanes) ----
    out_cols = 2 * nbE + nbDb + Ec + 1 + nb
    w_out = max(128, ((out_cols + 127) // 128) * 128)
    dims = dict(nb=nb, Db=Db, H=H, E=E, Ec=Ec, w_out=w_out)

    vmem = pl.BlockSpec(memory_space=pltpu.MemorySpace.VMEM)
    out = pl.pallas_call(
        _make_kernel(dims, rows),
        in_specs=[vmem] * 9,
        out_specs=vmem,
        out_shape=jax.ShapeDtypeStruct((B, w_out), F32),
        # 32 MiB scoped VMEM is safe on v5e/v6e/v7x; re-tune per generation if
        # batch tiling is added (see TODO in the header).
        compiler_params=pltpu.CompilerParams(vmem_limit_bytes=32 * 1024 * 1024),
    )(x_packed, ew1, ew2, dw1, dw2, bhw, cew, cdw, slab)

    # wrapper-side slicing of the packed output (layout plumbing, no compute)
    o = 0
    z = out[:, o:o + nbE]; o += nbE        # original_common
    dec = out[:, o:o + nbE]; o += nbE      # common decoded
    bdec = out[:, o:o + nbDb]; o += nbDb   # lane-packed per-block decodes
    cenc = out[:, o:o + Ec]; o += Ec       # common encoded
    chaz = out[:, o:o + 1]; o += 1         # common hazard
    bhaz = out[:, o:o + nb]                # lane-packed per-block hazards

    original_blocks = [x[:, jnp.asarray(block)] for block in blocks]
    blocks_decoded = [bdec[:, i * Db:(i + 1) * Db] for i in range(nb)]
    block_hazards = [bhaz[:, i:i + 1] for i in range(nb)]
    return (chaz, z, dec, original_blocks, blocks_decoded, block_hazards, cenc)


# ---------------------------------------------------------------------------
# parameter init (shapes match HierarchicalSAE.__init__)
# ---------------------------------------------------------------------------
def init_params(key, nb, Db, H, E, Ec):
    keys = jax.random.split(key, 16)

    def rnd(k, shape, scale=0.1):
        return (scale * jax.random.normal(k, shape)).astype(F32)

    ones = lambda s: jnp.ones(s, F32)
    zeros = lambda s: jnp.zeros(s, F32)

    return {
        # block encoder: Linear(Db,H) -> PReLU -> BN(H) -> Linear(H,E)
        "enc_w1": rnd(keys[0], (nb, Db, H)), "enc_b1": rnd(keys[1], (nb, H)),
        "enc_a": jnp.full((nb, 1), 0.25, F32),
        "enc_bn_g": ones((nb, H)), "enc_bn_b": zeros((nb, H)),
        "enc_w2": rnd(keys[2], (nb, H, E)), "enc_b2": rnd(keys[3], (nb, E)),
        # block decoder: BN(E) -> Linear(E,H) -> PReLU -> BN(H) -> Linear(H,Db)
        "dec_bn1_g": ones((nb, E)), "dec_bn1_b": zeros((nb, E)),
        "dec_w1": rnd(keys[4], (nb, E, H)), "dec_b1": rnd(keys[5], (nb, H)),
        "dec_a": jnp.full((nb, 1), 0.25, F32),
        "dec_bn2_g": ones((nb, H)), "dec_bn2_b": zeros((nb, H)),
        "dec_w2": rnd(keys[6], (nb, H, Db)), "dec_b2": rnd(keys[7], (nb, Db)),
        # block hazard: BN(E) -> Linear(E,1)
        "haz_bn_g": ones((nb, E)), "haz_bn_b": zeros((nb, E)),
        "haz_w": rnd(keys[8], (nb, E, 1)), "haz_b": rnd(keys[9], (nb, 1)),
        # common AE: Linear(nb*E, Ec); decoder BN(Ec) -> Linear(Ec, nb*E)
        "cenc_w": rnd(keys[10], (nb * E, Ec)), "cenc_b": rnd(keys[11], (1, Ec)),
        "cdec_bn_g": ones((1, Ec)), "cdec_bn_b": zeros((1, Ec)),
        "cdec_w": rnd(keys[12], (Ec, nb * E)), "cdec_b": rnd(keys[13], (1, nb * E)),
        # common hazard: BN(Ec) -> Linear(Ec,1)
        "chaz_bn_g": ones((1, Ec)), "chaz_bn_b": zeros((1, Ec)),
        "chaz_w": rnd(keys[14], (Ec, 1)), "chaz_b": rnd(keys[15], (1, 1)),
    }


# ---------------------------------------------------------------------------
# pure-JAX float32 reference (PyTorch-faithful)
# ---------------------------------------------------------------------------
def reference_forward(x, p, blocks):
    enc_list, dec_list, bhaz_list, orig_list = [], [], [], []
    for i, block in enumerate(blocks):
        xb = x[:, jnp.asarray(block)]
        orig_list.append(xb)
        h = xb @ p["enc_w1"][i] + p["enc_b1"][i]
        h = _prelu(h, p["enc_a"][i, 0])
        h = _bn(h, p["enc_bn_g"][i], p["enc_bn_b"][i])
        z = h @ p["enc_w2"][i] + p["enc_b2"][i]
        enc_list.append(z)
        d = _bn(z, p["dec_bn1_g"][i], p["dec_bn1_b"][i])
        d = d @ p["dec_w1"][i] + p["dec_b1"][i]
        d = _prelu(d, p["dec_a"][i, 0])
        d = _bn(d, p["dec_bn2_g"][i], p["dec_bn2_b"][i])
        d = d @ p["dec_w2"][i] + p["dec_b2"][i]
        dec_list.append(d)
        hz = _bn(z, p["haz_bn_g"][i], p["haz_bn_b"][i])
        hz = hz @ p["haz_w"][i] + p["haz_b"][i]
        bhaz_list.append(hz)
    common = jnp.concatenate(enc_list, axis=1)
    cz = common @ p["cenc_w"] + p["cenc_b"]
    cd = _bn(cz, p["cdec_bn_g"], p["cdec_bn_b"])
    cd = cd @ p["cdec_w"] + p["cdec_b"]
    hz = _bn(cz, p["chaz_bn_g"], p["chaz_bn_b"])
    hz = hz @ p["chaz_w"] + p["chaz_b"]
    return (hz, common, cd, orig_list, dec_list, bhaz_list, cz)


if __name__ == "__main__":
    # 2 blocks of 16 features each -> x: (8, 32)
    # block_hidden_layers=1, block_hidden_layer_size=32, block_embedding=16
    # common_hidden_layers=0, common_embedding=16, hazard_hidden_layers=0
    B, nb, Db, H, E, Ec = 8, 2, 16, 32, 16, 16
    blocks = [list(range(i * Db, (i + 1) * Db)) for i in range(nb)]

    key = jax.random.PRNGKey(0)
    kx, kp = jax.random.split(key)
    x = jax.random.normal(kx, (B, nb * Db), dtype=jnp.float32)
    params = init_params(kp, nb, Db, H, E, Ec)

    fwd = jax.jit(functools.partial(hierarchical_sae_forward, blocks=blocks))
    out = fwd(x, params)
    out = jax.block_until_ready(out)

    ref = reference_forward(x, params, blocks)

    haz, common, dec, oblk, bdec, bhaz, cenc = out
    rhaz, rcommon, rdec, roblk, rbdec, rbhaz, rcenc = ref

    # bf16 activations/weights on the MXU (f32 accumulate) vs f32 reference.
    def ok(a, b):
        return np.allclose(np.asarray(a), np.asarray(b), rtol=2e-2, atol=2e-2)

    assert ok(haz, rhaz)
    assert ok(common, rcommon)
    assert ok(dec, rdec)
    assert ok(cenc, rcenc)
    assert all(ok(a, b) for a, b in zip(oblk, roblk))
    assert all(ok(a, b) for a, b in zip(bdec, rbdec))
    assert all(ok(a, b) for a, b in zip(bhaz, rbhaz))

    print("KERNEL_OK")
</pallas_src>

<mosaic_0001>
module attributes {stable_mosaic.version = 11 : i64} {
  func.func @kernel(%arg0: memref<8x32xbf16, #tpu.memory_space<vmem>>, %arg1: memref<32x64xbf16, #tpu.memory_space<vmem>>, %arg2: memref<64x32xbf16, #tpu.memory_space<vmem>>, %arg3: memref<32x64xbf16, #tpu.memory_space<vmem>>, %arg4: memref<64x32xbf16, #tpu.memory_space<vmem>>, %arg5: memref<32x2xbf16, #tpu.memory_space<vmem>>, %arg6: memref<32x16xbf16, #tpu.memory_space<vmem>>, %arg7: memref<16x32xbf16, #tpu.memory_space<vmem>>, %arg8: memref<23x64xf32, #tpu.memory_space<vmem>>, %arg9: memref<8x128xf32, #tpu.memory_space<vmem>>) attributes {dimension_semantics = [], scalar_prefetch = 0 : i64, scratch_operands = 0 : i64, tpu.core_type = #tpu.core_type<tc>} {
    %c0 = arith.constant 0 : index
    %c0_0 = arith.constant 0 : index
    %0 = vector.load %arg8[%c0, %c0_0] : memref<23x64xf32, #tpu.memory_space<vmem>>, vector<23x64xf32>
    %c0_1 = arith.constant 0 : index
    %c0_2 = arith.constant 0 : index
    %1 = vector.load %arg0[%c0_1, %c0_2] : memref<8x32xbf16, #tpu.memory_space<vmem>>, vector<8x32xbf16>
    %c0_3 = arith.constant 0 : index
    %c0_4 = arith.constant 0 : index
    %2 = vector.load %arg1[%c0_3, %c0_4] : memref<32x64xbf16, #tpu.memory_space<vmem>>, vector<32x64xbf16>
    %cst = arith.constant dense<0.000000e+00> : vector<8x64xf32>
    %3 = tpu.matmul %1, %2, %cst {dimension_numbers = #tpu.dot_dimension_numbers<[1], [0], [0], [1], [0, 0, 1, 1], [], []>} : vector<8x32xbf16>, vector<32x64xbf16>, vector<8x64xf32> -> vector<8x64xf32>
    %4 = vector.extract_strided_slice %0 {offsets = [0, 0], sizes = [1, 64], strides = [1, 1]} : vector<23x64xf32> to vector<1x64xf32>
    %5 = vector.broadcast %4 : vector<1x64xf32> to vector<8x64xf32>
    %6 = arith.addf %3, %5 : vector<8x64xf32>
    %7 = vector.extract_strided_slice %0 {offsets = [1, 0], sizes = [1, 64], strides = [1, 1]} : vector<23x64xf32> to vector<1x64xf32>
    %cst_5 = arith.constant 0.000000e+00 : f32
    %8 = vector.broadcast %cst_5 : f32 to vector<8x64xf32>
    %9 = arith.cmpf ogt, %6, %8 : vector<8x64xf32>
    %10 = vector.broadcast %7 : vector<1x64xf32> to vector<8x64xf32>
    %11 = arith.mulf %10, %6 : vector<8x64xf32>
    %12 = arith.select %9, %6, %11 : vector<8x64xi1>, vector<8x64xf32>
    %13 = vector.extract_strided_slice %0 {offsets = [2, 0], sizes = [1, 64], strides = [1, 1]} : vector<23x64xf32> to vector<1x64xf32>
    %14 = vector.extract_strided_slice %0 {offsets = [3, 0], sizes = [1, 64], strides = [1, 1]} : vector<23x64xf32> to vector<1x64xf32>
    %cst_6 = arith.constant dense<0.000000e+00> : vector<64xf32>
    %15 = vector.multi_reduction <add>, %12, %cst_6 [0] : vector<8x64xf32> to vector<64xf32>
    %16 = vector.shape_cast %15 : vector<64xf32> to vector<1x64xf32>
    %cst_7 = arith.constant 8.000000e+00 : f32
    %17 = vector.broadcast %cst_7 : f32 to vector<1x64xf32>
    %18 = arith.divf %16, %17 : vector<1x64xf32>
    %19 = vector.broadcast %18 : vector<1x64xf32> to vector<8x64xf32>
    %20 = arith.subf %12, %19 : vector<8x64xf32>
    %21 = arith.mulf %20, %20 : vector<8x64xf32>
    %cst_8 = arith.constant dense<0.000000e+00> : vector<64xf32>
    %22 = vector.multi_reduction <add>, %21, %cst_8 [0] : vector<8x64xf32> to vector<64xf32>
    %23 = vector.shape_cast %22 : vector<64xf32> to vector<1x64xf32>
    %cst_9 = arith.constant 8.000000e+00 : f32
    %24 = vector.broadcast %cst_9 : f32 to vector<1x64xf32>
    %25 = arith.divf %23, %24 : vector<1x64xf32>
    %cst_10 = arith.constant 9.99999974E-6 : f32
    %26 = vector.broadcast %cst_10 : f32 to vector<1x64xf32>
    %27 = arith.addf %25, %26 : vector<1x64xf32>
    %28 = math.rsqrt %27 : vector<1x64xf32>
    %29 = arith.mulf %13, %28 : vector<1x64xf32>
    %30 = vector.broadcast %29 : vector<1x64xf32> to vector<8x64xf32>
    %31 = arith.mulf %20, %30 : vector<8x64xf32>
    %32 = vector.broadcast %14 : vector<1x64xf32> to vector<8x64xf32>
    %33 = arith.addf %31, %32 : vector<8x64xf32>
    %34 = arith.truncf %33 : vector<8x64xf32> to vector<8x64xbf16>
    %c0_11 = arith.constant 0 : index
    %c0_12 = arith.constant 0 : index
    %35 = vector.load %arg2[%c0_11, %c0_12] : memref<64x32xbf16, #tpu.memory_space<vmem>>, vector<64x32xbf16>
    %cst_13 = arith.constant dense<0.000000e+00> : vector<8x32xf32>
    %36 = tpu.matmul %34, %35, %cst_13 {dimension_numbers = #tpu.dot_dimension_numbers<[1], [0], [0], [1], [0, 0, 1, 1], [], []>} : vector<8x64xbf16>, vector<64x32xbf16>, vector<8x32xf32> -> vector<8x32xf32>
    %37 = vector.extract_strided_slice %0 {offsets = [4, 0], sizes = [1, 32], strides = [1, 1]} : vector<23x64xf32> to vector<1x32xf32>
    %38 = vector.broadcast %37 : vector<1x32xf32> to vector<8x32xf32>
    %39 = arith.addf %36, %38 : vector<8x32xf32>
    %40 = vector.extract_strided_slice %0 {offsets = [5, 0], sizes = [1, 32], strides = [1, 1]} : vector<23x64xf32> to vector<1x32xf32>
    %41 = vector.extract_strided_slice %0 {offsets = [6, 0], sizes = [1, 32], strides = [1, 1]} : vector<23x64xf32> to vector<1x32xf32>
    %cst_14 = arith.constant dense<0.000000e+00> : vector<32xf32>
    %42 = vector.multi_reduction <add>, %39, %cst_14 [0] : vector<8x32xf32> to vector<32xf32>
    %43 = vector.shape_cast %42 : vector<32xf32> to vector<1x32xf32>
    %cst_15 = arith.constant 8.000000e+00 : f32
    %44 = vector.broadcast %cst_15 : f32 to vector<1x32xf32>
    %45 = arith.divf %43, %44 : vector<1x32xf32>
    %46 = vector.broadcast %45 : vector<1x32xf32> to vector<8x32xf32>
    %47 = arith.subf %39, %46 : vector<8x32xf32>
    %48 = arith.mulf %47, %47 : vector<8x32xf32>
    %cst_16 = arith.constant dense<0.000000e+00> : vector<32xf32>
    %49 = vector.multi_reduction <add>, %48, %cst_16 [0] : vector<8x32xf32> to vector<32xf32>
    %50 = vector.shape_cast %49 : vector<32xf32> to vector<1x32xf32>
    %cst_17 = arith.constant 8.000000e+00 : f32
    %51 = vector.broadcast %cst_17 : f32 to vector<1x32xf32>
    %52 = arith.divf %50, %51 : vector<1x32xf32>
    %cst_18 = arith.constant 9.99999974E-6 : f32
    %53 = vector.broadcast %cst_18 : f32 to vector<1x32xf32>
    %54 = arith.addf %52, %53 : vector<1x32xf32>
    %55 = math.rsqrt %54 : vector<1x32xf32>
    %56 = arith.mulf %40, %55 : vector<1x32xf32>
    %57 = vector.broadcast %56 : vector<1x32xf32> to vector<8x32xf32>
    %58 = arith.mulf %47, %57 : vector<8x32xf32>
    %59 = vector.broadcast %41 : vector<1x32xf32> to vector<8x32xf32>
    %60 = arith.addf %58, %59 : vector<8x32xf32>
    %61 = arith.truncf %60 : vector<8x32xf32> to vector<8x32xbf16>
    %c0_19 = arith.constant 0 : index
    %c0_20 = arith.constant 0 : index
    %62 = vector.load %arg3[%c0_19, %c0_20] : memref<32x64xbf16, #tpu.memory_space<vmem>>, vector<32x64xbf16>
    %cst_21 = arith.constant dense<0.000000e+00> : vector<8x64xf32>
    %63 = tpu.matmul %61, %62, %cst_21 {dimension_numbers = #tpu.dot_dimension_numbers<[1], [0], [0], [1], [0, 0, 1, 1], [], []>} : vector<8x32xbf16>, vector<32x64xbf16>, vector<8x64xf32> -> vector<8x64xf32>
    %64 = vector.extract_strided_slice %0 {offsets = [7, 0], sizes = [1, 64], strides = [1, 1]} : vector<23x64xf32> to vector<1x64xf32>
    %65 = vector.broadcast %64 : vector<1x64xf32> to vector<8x64xf32>
    %66 = arith.addf %63, %65 : vector<8x64xf32>
    %67 = vector.extract_strided_slice %0 {offsets = [8, 0], sizes = [1, 64], strides = [1, 1]} : vector<23x64xf32> to vector<1x64xf32>
    %cst_22 = arith.constant 0.000000e+00 : f32
    %68 = vector.broadcast %cst_22 : f32 to vector<8x64xf32>
    %69 = arith.cmpf ogt, %66, %68 : vector<8x64xf32>
    %70 = vector.broadcast %67 : vector<1x64xf32> to vector<8x64xf32>
    %71 = arith.mulf %70, %66 : vector<8x64xf32>
    %72 = arith.select %69, %66, %71 : vector<8x64xi1>, vector<8x64xf32>
    %73 = vector.extract_strided_slice %0 {offsets = [9, 0], sizes = [1, 64], strides = [1, 1]} : vector<23x64xf32> to vector<1x64xf32>
    %74 = vector.extract_strided_slice %0 {offsets = [10, 0], sizes = [1, 64], strides = [1, 1]} : vector<23x64xf32> to vector<1x64xf32>
    %cst_23 = arith.constant dense<0.000000e+00> : vector<64xf32>
    %75 = vector.multi_reduction <add>, %72, %cst_23 [0] : vector<8x64xf32> to vector<64xf32>
    %76 = vector.shape_cast %75 : vector<64xf32> to vector<1x64xf32>
    %cst_24 = arith.constant 8.000000e+00 : f32
    %77 = vector.broadcast %cst_24 : f32 to vector<1x64xf32>
    %78 = arith.divf %76, %77 : vector<1x64xf32>
    %79 = vector.broadcast %78 : vector<1x64xf32> to vector<8x64xf32>
    %80 = arith.subf %72, %79 : vector<8x64xf32>
    %81 = arith.mulf %80, %80 : vector<8x64xf32>
    %cst_25 = arith.constant dense<0.000000e+00> : vector<64xf32>
    %82 = vector.multi_reduction <add>, %81, %cst_25 [0] : vector<8x64xf32> to vector<64xf32>
    %83 = vector.shape_cast %82 : vector<64xf32> to vector<1x64xf32>
    %cst_26 = arith.constant 8.000000e+00 : f32
    %84 = vector.broadcast %cst_26 : f32 to vector<1x64xf32>
    %85 = arith.divf %83, %84 : vector<1x64xf32>
    %cst_27 = arith.constant 9.99999974E-6 : f32
    %86 = vector.broadcast %cst_27 : f32 to vector<1x64xf32>
    %87 = arith.addf %85, %86 : vector<1x64xf32>
    %88 = math.rsqrt %87 : vector<1x64xf32>
    %89 = arith.mulf %73, %88 : vector<1x64xf32>
    %90 = vector.broadcast %89 : vector<1x64xf32> to vector<8x64xf32>
    %91 = arith.mulf %80, %90 : vector<8x64xf32>
    %92 = vector.broadcast %74 : vector<1x64xf32> to vector<8x64xf32>
    %93 = arith.addf %91, %92 : vector<8x64xf32>
    %94 = arith.truncf %93 : vector<8x64xf32> to vector<8x64xbf16>
    %c0_28 = arith.constant 0 : index
    %c0_29 = arith.constant 0 : index
    %95 = vector.load %arg4[%c0_28, %c0_29] : memref<64x32xbf16, #tpu.memory_space<vmem>>, vector<64x32xbf16>
    %cst_30 = arith.constant dense<0.000000e+00> : vector<8x32xf32>
    %96 = tpu.matmul %94, %95, %cst_30 {dimension_numbers = #tpu.dot_dimension_numbers<[1], [0], [0], [1], [0, 0, 1, 1], [], []>} : vector<8x64xbf16>, vector<64x32xbf16>, vector<8x32xf32> -> vector<8x32xf32>
    %97 = vector.extract_strided_slice %0 {offsets = [11, 0], sizes = [1, 32], strides = [1, 1]} : vector<23x64xf32> to vector<1x32xf32>
    %98 = vector.broadcast %97 : vector<1x32xf32> to vector<8x32xf32>
    %99 = arith.addf %96, %98 : vector<8x32xf32>
    %100 = vector.extract_strided_slice %0 {offsets = [12, 0], sizes = [1, 32], strides = [1, 1]} : vector<23x64xf32> to vector<1x32xf32>
    %101 = vector.extract_strided_slice %0 {offsets = [13, 0], sizes = [1, 32], strides = [1, 1]} : vector<23x64xf32> to vector<1x32xf32>
    %cst_31 = arith.constant dense<0.000000e+00> : vector<32xf32>
    %102 = vector.multi_reduction <add>, %39, %cst_31 [0] : vector<8x32xf32> to vector<32xf32>
    %103 = vector.shape_cast %102 : vector<32xf32> to vector<1x32xf32>
    %cst_32 = arith.constant 8.000000e+00 : f32
    %104 = vector.broadcast %cst_32 : f32 to vector<1x32xf32>
    %105 = arith.divf %103, %104 : vector<1x32xf32>
    %106 = vector.broadcast %105 : vector<1x32xf32> to vector<8x32xf32>
    %107 = arith.subf %39, %106 : vector<8x32xf32>
    %108 = arith.mulf %107, %107 : vector<8x32xf32>
    %cst_33 = arith.constant dense<0.000000e+00> : vector<32xf32>
    %109 = vector.multi_reduction <add>, %108, %cst_33 [0] : vector<8x32xf32> to vector<32xf32>
    %110 = vector.shape_cast %109 : vector<32xf32> to vector<1x32xf32>
    %cst_34 = arith.constant 8.000000e+00 : f32
    %111 = vector.broadcast %cst_34 : f32 to vector<1x32xf32>
    %112 = arith.divf %110, %111 : vector<1x32xf32>
    %cst_35 = arith.constant 9.99999974E-6 : f32
    %113 = vector.broadcast %cst_35 : f32 to vector<1x32xf32>
    %114 = arith.addf %112, %113 : vector<1x32xf32>
    %115 = math.rsqrt %114 : vector<1x32xf32>
    %116 = arith.mulf %100, %115 : vector<1x32xf32>
    %117 = vector.broadcast %116 : vector<1x32xf32> to vector<8x32xf32>
    %118 = arith.mulf %107, %117 : vector<8x32xf32>
    %119 = vector.broadcast %101 : vector<1x32xf32> to vector<8x32xf32>
    %120 = arith.addf %118, %119 : vector<8x32xf32>
    %121 = arith.truncf %120 : vector<8x32xf32> to vector<8x32xbf16>
    %c0_36 = arith.constant 0 : index
    %c0_37 = arith.constant 0 : index
    %122 = vector.load %arg5[%c0_36, %c0_37] : memref<32x2xbf16, #tpu.memory_space<vmem>>, vector<32x2xbf16>
    %cst_38 = arith.constant dense<0.000000e+00> : vector<8x2xf32>
    %123 = tpu.matmul %121, %122, %cst_38 {dimension_numbers = #tpu.dot_dimension_numbers<[1], [0], [0], [1], [0, 0, 1, 1], [], []>} : vector<8x32xbf16>, vector<32x2xbf16>, vector<8x2xf32> -> vector<8x2xf32>
    %124 = vector.extract_strided_slice %0 {offsets = [14, 0], sizes = [1, 2], strides = [1, 1]} : vector<23x64xf32> to vector<1x2xf32>
    %125 = vector.broadcast %124 : vector<1x2xf32> to vector<8x2xf32>
    %126 = arith.addf %123, %125 : vector<8x2xf32>
    %127 = arith.truncf %39 : vector<8x32xf32> to vector<8x32xbf16>
    %c0_39 = arith.constant 0 : index
    %c0_40 = arith.constant 0 : index
    %128 = vector.load %arg6[%c0_39, %c0_40] : memref<32x16xbf16, #tpu.memory_space<vmem>>, vector<32x16xbf16>
    %cst_41 = arith.constant dense<0.000000e+00> : vector<8x16xf32>
    %129 = tpu.matmul %127, %128, %cst_41 {dimension_numbers = #tpu.dot_dimension_numbers<[1], [0], [0], [1], [0, 0, 1, 1], [], []>} : vector<8x32xbf16>, vector<32x16xbf16>, vector<8x16xf32> -> vector<8x16xf32>
    %130 = vector.extract_strided_slice %0 {offsets = [15, 0], sizes = [1, 16], strides = [1, 1]} : vector<23x64xf32> to vector<1x16xf32>
    %131 = vector.broadcast %130 : vector<1x16xf32> to vector<8x16xf32>
    %132 = arith.addf %129, %131 : vector<8x16xf32>
    %133 = vector.extract_strided_slice %0 {offsets = [16, 0], sizes = [1, 16], strides = [1, 1]} : vector<23x64xf32> to vector<1x16xf32>
    %134 = vector.extract_strided_slice %0 {offsets = [17, 0], sizes = [1, 16], strides = [1, 1]} : vector<23x64xf32> to vector<1x16xf32>
    %cst_42 = arith.constant dense<0.000000e+00> : vector<16xf32>
    %135 = vector.multi_reduction <add>, %132, %cst_42 [0] : vector<8x16xf32> to vector<16xf32>
    %136 = vector.shape_cast %135 : vector<16xf32> to vector<1x16xf32>
    %cst_43 = arith.constant 8.000000e+00 : f32
    %137 = vector.broadcast %cst_43 : f32 to vector<1x16xf32>
    %138 = arith.divf %136, %137 : vector<1x16xf32>
    %139 = vector.broadcast %138 : vector<1x16xf32> to vector<8x16xf32>
    %140 = arith.subf %132, %139 : vector<8x16xf32>
    %141 = arith.mulf %140, %140 : vector<8x16xf32>
    %cst_44 = arith.constant dense<0.000000e+00> : vector<16xf32>
    %142 = vector.multi_reduction <add>, %141, %cst_44 [0] : vector<8x16xf32> to vector<16xf32>
    %143 = vector.shape_cast %142 : vector<16xf32> to vector<1x16xf32>
    %cst_45 = arith.constant 8.000000e+00 : f32
    %144 = vector.broadcast %cst_45 : f32 to vector<1x16xf32>
    %145 = arith.divf %143, %144 : vector<1x16xf32>
    %cst_46 = arith.constant 9.99999974E-6 : f32
    %146 = vector.broadcast %cst_46 : f32 to vector<1x16xf32>
    %147 = arith.addf %145, %146 : vector<1x16xf32>
    %148 = math.rsqrt %147 : vector<1x16xf32>
    %149 = arith.mulf %133, %148 : vector<1x16xf32>
    %150 = vector.broadcast %149 : vector<1x16xf32> to vector<8x16xf32>
    %151 = arith.mulf %140, %150 : vector<8x16xf32>
    %152 = vector.broadcast %134 : vector<1x16xf32> to vector<8x16xf32>
    %153 = arith.addf %151, %152 : vector<8x16xf32>
    %154 = arith.truncf %153 : vector<8x16xf32> to vector<8x16xbf16>
    %c0_47 = arith.constant 0 : index
    %c0_48 = arith.constant 0 : index
    %155 = vector.load %arg7[%c0_47, %c0_48] : memref<16x32xbf16, #tpu.memory_space<vmem>>, vector<16x32xbf16>
    %cst_49 = arith.constant dense<0.000000e+00> : vector<8x32xf32>
    %156 = tpu.matmul %154, %155, %cst_49 {dimension_numbers = #tpu.dot_dimension_numbers<[1], [0], [0], [1], [0, 0, 1, 1], [], []>} : vector<8x16xbf16>, vector<16x32xbf16>, vector<8x32xf32> -> vector<8x32xf32>
    %157 = vector.extract_strided_slice %0 {offsets = [18, 0], sizes = [1, 32], strides = [1, 1]} : vector<23x64xf32> to vector<1x32xf32>
    %158 = vector.broadcast %157 : vector<1x32xf32> to vector<8x32xf32>
    %159 = arith.addf %156, %158 : vector<8x32xf32>
    %160 = vector.extract_strided_slice %0 {offsets = [19, 0], sizes = [1, 16], strides = [1, 1]} : vector<23x64xf32> to vector<1x16xf32>
    %161 = vector.extract_strided_slice %0 {offsets = [20, 0], sizes = [1, 16], strides = [1, 1]} : vector<23x64xf32> to vector<1x16xf32>
    %cst_50 = arith.constant dense<0.000000e+00> : vector<16xf32>
    %162 = vector.multi_reduction <add>, %132, %cst_50 [0] : vector<8x16xf32> to vector<16xf32>
    %163 = vector.shape_cast %162 : vector<16xf32> to vector<1x16xf32>
    %cst_51 = arith.constant 8.000000e+00 : f32
    %164 = vector.broadcast %cst_51 : f32 to vector<1x16xf32>
    %165 = arith.divf %163, %164 : vector<1x16xf32>
    %166 = vector.broadcast %165 : vector<1x16xf32> to vector<8x16xf32>
    %167 = arith.subf %132, %166 : vector<8x16xf32>
    %168 = arith.mulf %167, %167 : vector<8x16xf32>
    %cst_52 = arith.constant dense<0.000000e+00> : vector<16xf32>
    %169 = vector.multi_reduction <add>, %168, %cst_52 [0] : vector<8x16xf32> to vector<16xf32>
    %170 = vector.shape_cast %169 : vector<16xf32> to vector<1x16xf32>
    %cst_53 = arith.constant 8.000000e+00 : f32
    %171 = vector.broadcast %cst_53 : f32 to vector<1x16xf32>
    %172 = arith.divf %170, %171 : vector<1x16xf32>
    %cst_54 = arith.constant 9.99999974E-6 : f32
    %173 = vector.broadcast %cst_54 : f32 to vector<1x16xf32>
    %174 = arith.addf %172, %173 : vector<1x16xf32>
    %175 = math.rsqrt %174 : vector<1x16xf32>
    %176 = arith.mulf %160, %175 : vector<1x16xf32>
    %177 = vector.broadcast %176 : vector<1x16xf32> to vector<8x16xf32>
    %178 = arith.mulf %167, %177 : vector<8x16xf32>
    %179 = vector.broadcast %161 : vector<1x16xf32> to vector<8x16xf32>
    %180 = arith.addf %178, %179 : vector<8x16xf32>
    %181 = vector.extract_strided_slice %0 {offsets = [21, 0], sizes = [1, 16], strides = [1, 1]} : vector<23x64xf32> to vector<1x16xf32>
    %182 = vector.broadcast %181 : vector<1x16xf32> to vector<8x16xf32>
    %183 = arith.mulf %180, %182 : vector<8x16xf32>
    %cst_55 = arith.constant dense<0.000000e+00> : vector<8xf32>
    %184 = vector.multi_reduction <add>, %183, %cst_55 [1] : vector<8x16xf32> to vector<8xf32>
    %185 = vector.shape_cast %184 : vector<8xf32> to vector<8x1xf32>
    %186 = vector.extract_strided_slice %0 {offsets = [22, 0], sizes = [1, 1], strides = [1, 1]} : vector<23x64xf32> to vector<1x1xf32>
    %187 = vector.broadcast %186 : vector<1x1xf32> to vector<8x1xf32>
    %188 = arith.addf %185, %187 : vector<8x1xf32>
    %cst_56 = arith.constant 0.000000e+00 : f32
    %189 = vector.broadcast %cst_56 : f32 to vector<8x13xf32>
    %190 = tpu.concatenate %39, %159, %99, %132, %188, %126, %189 in 1 : vector<8x32xf32>, vector<8x32xf32>, vector<8x32xf32>, vector<8x16xf32>, vector<8x1xf32>, vector<8x2xf32>, vector<8x13xf32> -> vector<8x128xf32>
    %c0_57 = arith.constant 0 : index
    %c0_58 = arith.constant 0 : index
    %191 = vector.load %arg9[%c0_57, %c0_58] : memref<8x128xf32, #tpu.memory_space<vmem>>, vector<8x128xf32>
    tpu.vector_store %arg9[%c0_57, %c0_58], %190 {strides = array<i32>} : memref<8x128xf32, #tpu.memory_space<vmem>>, vector<8x128xf32>,
    return
  }
}

</mosaic_0001>

<bundles_post_ra>
// kernel: hierarchical_sae_forward.1
= control target key start
LH: loop header
LB: loop body
LE: loop exit
PB: predicated region body
PF: predicated region fallthrough
CT: control target
= control target key end

     0   :  { %vm54_vm0 = vcmask 261120   ;;  %v611_v3 = vmov 8.0   ;;  %vm75_vm2 = vcmask 523264   ;;  %vm396_vm11 = vcmask 130048   ;;  %s613_s20 = smov 64   ;;  %s614_s21 = smov 113   ;;  %s796_s1 = inlined_call_operand.vmem [shape: bf16[32,64], index: 1, kind: input, shape index: {}]   ;;  %s797_s0 = inlined_call_operand.vmem [shape: bf16[8,32], index: 0, kind: input, shape index: {}]   ;;  %s798_s8 = inlined_call_operand.vmem [shape: f32[23,64], index: 8, kind: input, shape index: {}]   ;;  %s799_s2 = inlined_call_operand.vmem [shape: bf16[64,32], index: 2, kind: input, shape index: {}]   ;;  %s800_s3 = inlined_call_operand.vmem [shape: bf16[32,64], index: 3, kind: input, shape index: {}]   ;;  %s801_s5 = inlined_call_operand.vmem [shape: bf16[32,2], index: 5, kind: input, shape index: {}]   ;;  %s802_s6 = inlined_call_operand.vmem [shape: bf16[32,16], index: 6, kind: input, shape index: {}]   ;;  %s803_s4 = inlined_call_operand.vmem [shape: bf16[64,32], index: 4, kind: input, shape index: {}]   ;;  %s804_s7 = inlined_call_operand.vmem [shape: bf16[16,32], index: 7, kind: input, shape index: {}]   ;;  %s805_s9 = inlined_call_operand.vmem [shape: f32[8,128], index: 9, kind: output, shape index: {}]  }
   0x1   :  { %v579_v0 = vld [vmem:[%s796_s1 + $0x8] sm:$0xff]  ;;  %v578_v1 = vld [vmem:[%s796_s1] sm:$0xff]  ;;  %601 = vrcp.f32 %v611_v3  ;;  %v583_v19 = vld [vmem:[%s799_s2 + $0x18] sm:$0xff]  ;;  %s615_s22 = smov 32  }
   0x2   :  { %64 = vmatpush.bf16.msra.mxu0 %v579_v0  ;;  %v36_v2 = vld [vmem:[%s797_s0] sm:$0xf]  ;;  %158 = vmatpush.bf16.msra.mxu1 %v583_v19  ;;  %v582_v22 = vld [vmem:[%s799_s2 + $0x10] sm:$0xff]  ;;  %v581_v26 = vld [vmem:[%s799_s2 + $0x8] sm:$0xff] }
   0x3   :  { %v680_v4 = vld [vmem:[%s798_s8] sm:$0xff]  ;;  %v585_v57 = vld [vmem:[%s800_s3 + $0x8] sm:$0xff] }
   0x4   :  { %v41_v6 = vperm.slane %v680_v4, 0  ;;  %v72_v7 = vperm.slane %v680_v4, 1  ;;  %v580_v29 = vld [vmem:[%s799_s2] sm:$0xff]  ;;  %v115_v50 = vperm.slane %v680_v4, 3  ;;  %v126_v54 = vperm.slane %v680_v4, 4  ;;  %v591_v58 = vld [vmem:[%s801_s5 + $0x8] sm:$0xff]  ;;  %228 = vmatpush.bf16.msra.mxu2 %v585_v57 }
   0x5   :  { %v584_v60 = vld [vmem:[%s800_s3] sm:$0xff]  ;;  %v588_v57 = vld [vmem:[%s803_s4 + $0x10] sm:$0xff]  ;;  %s616_s2 = smov 96  }
   0x6   :  { %65 = vmatpush.bf16.msra.mxu0 %v578_v1  ;;  %159 = vmatpush.bf16.msra.mxu1 %v582_v22  ;;  %v590_v61 = vld [vmem:[%s801_s5] sm:$0xff] }
   0x7   :  { %v602_v5 = vpop.eup %601  ;;  %v592_v19 = vld [vmem:[%s802_s6] sm:$0xff] }
   0x8   :  { %v84_v9 = vmul.f32 8.0, %v602_v5  ;;  %vm88_vm3 = vweird.f32 %v602_v5  ;;  %229 = vmatpush.bf16.msra.mxu2 %v584_v60 }
   0x9   :  { %511 = vmatmul.msk.bf16.vlgmr.msra.gmra.mxu0 %vm54_vm0, %v36_v2 }
   0xa   :  { %v85_v12 = vsub.f32 1.0, %v84_v9  ;;  %160 = vmatpush.bf16.msra.mxu1 %v581_v26  ;;  %355 = vmatpush.bf16.msrb.mxu0 %v591_v58  ;;  %v735_v26 = vld [vmem:[%s798_s8 + $0x8] sm:$0xff] }
   0xc   :  { %v86_v16 = vmul.f32 %v602_v5, %v85_v12 }
   0xe   :  { %v87_v21 = vadd.f32 %v602_v5, %v86_v16  ;;  %161 = vmatpush.bf16.msra.mxu1 %v580_v29  ;;  %356 = vmatpush.bf16.msrb.mxu0 %v590_v61 }
  0x10   :  { %v691_v25 = vsel %vm88_vm3, %v602_v5, %v87_v21 }
  0x86   :  { %v67_v8 = vpop.f32.mrf.mxu0 }
  0x87   :  { %v68_v10 = vadd.f32 %v67_v8, %v41_v6 }
  0x89   :  { %vm71_vm1 = vcmp.gt.f32.partialorder %v68_v10, 0.0  ;;  %v73_v11 = vmul.f32 %v72_v7, %v68_v10 }
  0x8b   :  { %v74_v13 = vsel %vm71_vm1, %v68_v10, %v73_v11 }
  0x8c   :  { %v76_v14 = vsel %vm75_vm2, %v74_v13, 0.0 }
  0x8d   :  { %v77_v15 = vrot.slane %v76_v14, 4 }
  0x8e   :  { %v69_v17 = vpop.f32.mrf.mxu0 }
  0x8f   :  { %v78_v18 = vadd.f32 %v77_v15, %v76_v14  ;;  %v593_v17 = vld [vmem:[%s802_s6 + $0x8] sm:$0xff] }
  0x90   :  { %389 = vmatpush.bf16.msrb.mxu2 %v593_v17 }
  0x91   :  { %v79_v20 = vrot.slane %v78_v18, 2 }
  0x93   :  { %v80_v23 = vadd.f32 %v79_v20, %v78_v18 }
  0x94   :  { %390 = vmatpush.bf16.msrb.mxu2 %v592_v19 }
  0x95   :  { %v81_v24 = vrot.slane %v80_v23, 1 }
  0x97   :  { %v82_v27 = vadd.f32 %v81_v24, %v80_v23 }
  0x99   :  { %v90_v28 = vmul.f32 %v691_v25, %v82_v27 }
  0x9b   :  { %v91_v30 = vsub.f32 %v74_v13, %v90_v28 }
  0x9d   :  { %v92_v31 = vmul.f32 %v91_v30, %v91_v30 }
  0x9f   :  { %v93_v32 = vsel %vm75_vm2, %v92_v31, 0.0 }
  0xa0   :  { %v94_v33 = vrot.slane %v93_v32, 4 }
  0xa2   :  { %v95_v34 = vadd.f32 %v94_v33, %v93_v32  ;;  %v199_v32 = vperm.slane %v680_v4, 6 }
  0xa4   :  { %v96_v35 = vrot.slane %v95_v34, 2 }
  0xa6   :  { %v97_v36 = vadd.f32 %v96_v35, %v95_v34  ;;  %v326_v34 = vperm.slane %v735_v26, 5 }
  0xa8   :  { %v98_v37 = vrot.slane %v97_v36, 1 }
  0xaa   :  { %v99_v38 = vadd.f32 %v98_v37, %v97_v36 }
  0xac   :  { %v100_v39 = vmul.f32 %v99_v38, %v691_v25 }
  0xae   :  { %v101_v40 = vadd.f32 1e-05, %v100_v39 }
  0xb0   :  { %603 = vrsqrt.f32 %v101_v40  ;;  %vm108_vm5 = vweird.f32 %v101_v40 }
  0xb6   :  { %v604_v41 = vpop.eup %603 }
  0xb7   :  { %v103_v42 = vmul.f32 %v604_v41, %v101_v40  ;;  %vm109_vm4 = vweird.f32 %v604_v41 }
  0xb8   :  { %vm110_vm6 = vmor %vm108_vm5, %vm109_vm4  ;;  %vm490_vm4 = vcmask 785408   ;;  %vm492_vm5 = vcmask 916480  }
  0xb9   :  { %v104_v43 = vmul.f32 %v604_v41, %v103_v42 }
  0xbb   :  { %v105_v44 = vmul.f32 0.5, %v104_v43  ;;  %v206_v43 = vperm.slane %v680_v4, 7 }
  0xbd   :  { %v106_v45 = vsub.f32 1.5, %v105_v44  ;;  %v236_v44 = vperm.slane %v735_v26, 0 }
  0xbf   :  { %v107_v46 = vmul.f32 %v604_v41, %v106_v45 }
  0xc1   :  { %v111_v47 = vsel %vm110_vm6, %v604_v41, %v107_v46  ;;  %vm494_vm6 = vcmask 924672  }
  0xc2   :  { %v112_v48 = vmul.f32 %v111_v47, %v680_v4 }
  0xc4   :  { %v113_v49 = vperm.slane %v112_v48, 2 }
  0xc6   :  { %v114_v51 = vmul.f32 %v113_v49, %v91_v30 }
  0xc8   :  { %v116_v52 = vadd.f32 %v115_v50, %v114_v51 }
  0xca   :  { %v117_v53 = vpack.c.bf16 %v116_v52, %v116_v52 }
  0xcc   :  { %528 = vmatmul.msk.bf16.vlgmr.msra.gmra.mxu1 %vm75_vm2, %v117_v53 }
 0x149   :  { %v163_v55 = vpop.f32.mrf.mxu1 }
 0x14a   :  { %v706_v56 = vadd.f32 %v163_v55, %v126_v54  ;;  %v589_v54 = vld [vmem:[%s803_s4 + $0x18] sm:$0xff] }
 0x14b   :  { %314 = vmatpush.bf16.msra.mxu3 %v589_v54 }
 0x14c   :  { %v167_v59 = vsel %vm54_vm0, %v706_v56, 0.0  ;;  %v362_v41 = vpack.c.bf16 %v706_v56, %v706_v56 }
 0x14d   :  { %v168_v62 = vrot.slane %v167_v59, 4 }
 0x14f   :  { %v169_v63 = vadd.f32 %v168_v62, %v167_v59  ;;  %v367_v59 = vperm.slane %v735_v26, 7  ;;  %315 = vmatpush.bf16.msra.mxu3 %v588_v57  ;;  %v587_v62 = vld [vmem:[%s803_s4 + $0x8] sm:$0xff] }
 0x151   :  { %v170_v0 = vrot.slane %v169_v63, 2  ;;  %v165_v1 = vpop.f32.mrf.mxu1 }
 0x153   :  { %v171_v2 = vadd.f32 %v170_v0, %v169_v63  ;;  %316 = vmatpush.bf16.msra.mxu3 %v587_v62 }
 0x155   :  { %v172_v3 = vrot.slane %v171_v2, 1 }
 0x157   :  { %v173_v5 = vadd.f32 %v172_v3, %v171_v2  ;;  %v586_v3 = vld [vmem:[%s803_s4] sm:$0xff] }
 0x158   :  { %317 = vmatpush.bf16.msra.mxu3 %v586_v3 }
 0x159   :  { %v174_v6 = vmul.f32 %v173_v5, %v691_v25 }
 0x15b   :  { %v175_v7 = vsub.f32 %v706_v56, %v174_v6 }
 0x15d   :  { %v176_v8 = vmul.f32 %v175_v7, %v175_v7 }
 0x15f   :  { %v177_v9 = vsel %vm54_vm0, %v176_v8, 0.0 }
 0x160   :  { %v178_v10 = vrot.slane %v177_v9, 4 }
 0x162   :  { %v179_v11 = vadd.f32 %v178_v10, %v177_v9 }
 0x164   :  { %v180_v12 = vrot.slane %v179_v11, 2 }
 0x166   :  { %v181_v13 = vadd.f32 %v180_v12, %v179_v11 }
 0x168   :  { %v182_v14 = vrot.slane %v181_v13, 1 }
 0x16a   :  { %v183_v15 = vadd.f32 %v182_v14, %v181_v13 }
 0x16c   :  { %v184_v16 = vmul.f32 %v183_v15, %v691_v25 }
 0x16e   :  { %v185_v18 = vadd.f32 1e-05, %v184_v16 }
 0x170   :  { %605 = vrsqrt.f32 %v185_v18  ;;  %vm192_vm8 = vweird.f32 %v185_v18 }
 0x176   :  { %v606_v20 = vpop.eup %605 }
 0x177   :  { %v187_v21 = vmul.f32 %v606_v20, %v185_v18  ;;  %vm193_vm7 = vweird.f32 %v606_v20 }
 0x178   :  { %vm194_vm9 = vmor %vm192_vm8, %vm193_vm7  ;;  %vm496_vm7 = vcmask 941056  }
 0x179   :  { %v188_v22 = vmul.f32 %v606_v20, %v187_v21 }
 0x17b   :  { %v189_v23 = vmul.f32 0.5, %v188_v22 }
 0x17d   :  { %v190_v24 = vsub.f32 1.5, %v189_v23 }
 0x17f   :  { %v191_v27 = vmul.f32 %v606_v20, %v190_v24 }
 0x181   :  { %v195_v28 = vsel %vm194_vm9, %v606_v20, %v191_v27 }
 0x182   :  { %v196_v29 = vmul.f32 %v195_v28, %v680_v4  ;;  %v323_v30 = vmul.f32 %v195_v28, %v735_v26  ;;  %v594_v4 = vld [vmem:[%s804_s7] sm:$0xff] }
 0x183   :  { %451 = vmatpush.bf16.msrb.mxu1 %v594_v4 }
 0x184   :  { %v197_v31 = vperm.slane %v196_v29, 5  ;;  %v324_v33 = vperm.slane %v323_v30, 4 }
 0x186   :  { %v198_v35 = vmul.f32 %v197_v31, %v175_v7  ;;  %v325_v36 = vmul.f32 %v324_v33, %v175_v7 }
 0x188   :  { %v200_v37 = vadd.f32 %v199_v32, %v198_v35  ;;  %v327_v38 = vadd.f32 %v326_v34, %v325_v36 }
 0x18a   :  { %v201_v39 = vpack.c.bf16 %v200_v37, %v200_v37  ;;  %v328_v40 = vpack.c.bf16 %v327_v38, %v327_v38 }
 0x18c   :  { %537 = vmatmul.msk.bf16.vlgmr.msra.gmra.mxu2 %vm54_vm0, %v201_v39  ;;  %563 = vmatmul.msk.bf16.vlgmr.msrb.gmra.mxu0 %vm54_vm0, %v328_v40 }
 0x19c   :  { %572 = vmatmul.msk.bf16.vlgmr.msrb.gmra.mxu2 %vm54_vm0, %v362_v41 }
 0x209   :  { %v746_v42 = vpop.f32.mrf.mxu0 }
 0x20f   :  { %v231_v45 = vpop.f32.mrf.mxu2 }
 0x210   :  { %v232_v46 = vadd.f32 %v231_v45, %v206_v43 }
 0x211   :  { %v360_v47 = vpop.f32.mrf.mxu0 }
 0x212   :  { %vm235_vm10 = vcmp.gt.f32.partialorder %v232_v46, 0.0  ;;  %v237_v48 = vmul.f32 %v236_v44, %v232_v46 }
 0x214   :  { %v238_v49 = vsel %vm235_vm10, %v232_v46, %v237_v48  ;;  %v271_v48 = vperm.slane %v735_v26, 2 }
 0x215   :  { %v239_v50 = vsel %vm75_vm2, %v238_v49, 0.0 }
 0x216   :  { %v240_v51 = vrot.slane %v239_v50, 4 }
 0x217   :  { %v233_v52 = vpop.f32.mrf.mxu2 }
 0x218   :  { %v241_v53 = vadd.f32 %v240_v51, %v239_v50 }
 0x21a   :  { %v242_v55 = vrot.slane %v241_v53, 2 }
 0x21c   :  { %v243_v58 = vadd.f32 %v242_v55, %v241_v53  ;;  %v35_v55 = vld [vmem:[%s798_s8 + $0x10] sm:$0x7f]  ;;  %s612_s8 = smov 112  }
 0x21d   :  { %v459_v62 = vperm.slane %v35_v55, 4 }
 0x21e   :  { %v244_v60 = vrot.slane %v243_v58, 1 }
 0x21f   :  { %v392_v61 = vpop.f32.mrf.mxu2 }
 0x220   :  { %v245_v63 = vadd.f32 %v244_v60, %v243_v58  ;;  %v764_v0 = vadd.f32 %v392_v61, %v367_v59  ;;  %v429_v60 = vperm.slane %v35_v55, 1 }
 0x222   :  { %v246_v1 = vmul.f32 %v245_v63, %v691_v25  ;;  %v397_v2 = vsel %vm396_vm11, %v764_v0, 0.0 }
 0x223   :  { %v398_v5 = vrot.slane %v397_v2, 4 }
 0x224   :  { %v247_v6 = vsub.f32 %v238_v49, %v246_v1 }
 0x225   :  { %v399_v7 = vadd.f32 %v398_v5, %v397_v2  ;;  %v461_v2 = vperm.slane %v35_v55, 5 }
 0x226   :  { %v248_v8 = vmul.f32 %v247_v6, %v247_v6 }
 0x227   :  { %v394_v9 = vpop.f32.mrf.mxu2  ;;  %v400_v10 = vrot.slane %v399_v7, 2 }
 0x228   :  { %v249_v11 = vsel %vm75_vm2, %v248_v8, 0.0  ;;  %v466_v9 = vperm.slane %v35_v55, 6 }
 0x229   :  { %v250_v12 = vrot.slane %v249_v11, 4  ;;  %v401_v13 = vadd.f32 %v400_v10, %v399_v7  ;;  %v282_v10 = vperm.slane %v735_v26, 3 }
 0x22b   :  { %v251_v14 = vadd.f32 %v250_v12, %v249_v11  ;;  %v402_v15 = vrot.slane %v401_v13, 1 }
 0x22d   :  { %v252_v16 = vrot.slane %v251_v14, 2  ;;  %v403_v17 = vadd.f32 %v402_v15, %v401_v13  ;;  %v333_v15 = vperm.slane %v735_v26, 6 }
 0x22f   :  { %v253_v18 = vadd.f32 %v252_v16, %v251_v14  ;;  %v404_v19 = vmul.f32 %v403_v17, %v691_v25  ;;  %v434_v16 = vperm.slane %v35_v55, 2  ;;  %v359_v17 = vadd.f32 %v746_v42, %v333_v15 }
 0x231   :  { %v254_v20 = vrot.slane %v253_v18, 1  ;;  %v405_v21 = vsub.f32 %v764_v0, %v404_v19 }
 0x233   :  { %v255_v22 = vadd.f32 %v254_v20, %v253_v18  ;;  %v406_v23 = vmul.f32 %v405_v21, %v405_v21 }
 0x235   :  { %v256_v24 = vmul.f32 %v255_v22, %v691_v25  ;;  %v407_v27 = vsel %vm396_vm11, %v406_v23, 0.0 }
 0x236   :  { %v408_v28 = vrot.slane %v407_v27, 4 }
 0x237   :  { %v257_v29 = vadd.f32 1e-05, %v256_v24 }
 0x238   :  { %v409_v30 = vadd.f32 %v408_v28, %v407_v27 }
 0x239   :  { %607 = vrsqrt.f32 %v257_v29  ;;  %vm264_vm13 = vweird.f32 %v257_v29 }
 0x23a   :  { %v410_v31 = vrot.slane %v409_v30, 2 }
 0x23c   :  { %v411_v32 = vadd.f32 %v410_v31, %v409_v30 }
 0x23e   :  { %v412_v33 = vrot.slane %v411_v32, 1 }
 0x23f   :  { %v608_v34 = vpop.eup %607 }
 0x240   :  { %v259_v35 = vmul.f32 %v608_v34, %v257_v29  ;;  %v413_v36 = vadd.f32 %v412_v33, %v411_v32  ;;  %vm265_vm12 = vweird.f32 %v608_v34 }
 0x241   :  { %vm266_vm14 = vmor %vm264_vm13, %vm265_vm12 }
 0x242   :  { %v260_v37 = vmul.f32 %v608_v34, %v259_v35  ;;  %v414_v38 = vmul.f32 %v413_v36, %v691_v25 }
 0x244   :  { %v261_v39 = vmul.f32 0.5, %v260_v37  ;;  %v415_v40 = vadd.f32 1e-05, %v414_v38 }
 0x246   :  { %v262_v41 = vsub.f32 1.5, %v261_v39  ;;  %609 = vrsqrt.f32 %v415_v40  ;;  %vm422_vm1 = vweird.f32 %v415_v40 }
 0x248   :  { %v263_v43 = vmul.f32 %v608_v34, %v262_v41 }
 0x24a   :  { %v267_v44 = vsel %vm266_vm14, %v608_v34, %v263_v43 }
 0x24b   :  { %v268_v45 = vmul.f32 %v267_v44, %v735_v26 }
 0x24c   :  { %v610_v46 = vpop.eup %609 }
 0x24d   :  { %v269_v47 = vperm.slane %v268_v45, 1  ;;  %v417_v49 = vmul.f32 %v610_v46, %v415_v40  ;;  %vm423_vm15 = vweird.f32 %v610_v46 }
 0x24e   :  { %vm424_vm3 = vmor %vm422_vm1, %vm423_vm15 }
 0x24f   :  { %v270_v50 = vmul.f32 %v269_v47, %v247_v6  ;;  %v418_v51 = vmul.f32 %v610_v46, %v417_v49 }
 0x251   :  { %v272_v52 = vadd.f32 %v271_v48, %v270_v50  ;;  %v419_v25 = vmul.f32 0.5, %v418_v51 }
 0x253   :  { %v273_v53 = vpack.c.bf16 %v272_v52, %v272_v52  ;;  %v420_v54 = vsub.f32 1.5, %v419_v25 }
 0x255   :  { %554 = vmatmul.msk.bf16.vlgmr.msra.gmra.mxu3 %vm75_vm2, %v273_v53  ;;  %v421_v4 = vmul.f32 %v610_v46, %v420_v54 }
 0x257   :  { %v425_v57 = vsel %vm424_vm3, %v610_v46, %v421_v4 }
 0x258   :  { %v426_v58 = vmul.f32 %v425_v57, %v35_v55 }
 0x25a   :  { %v427_v59 = vperm.slane %v426_v58, 0  ;;  %v457_v61 = vperm.slane %v426_v58, 3 }
 0x25c   :  { %v428_v63 = vmul.f32 %v427_v59, %v405_v21  ;;  %v458_v1 = vmul.f32 %v457_v61, %v405_v21 }
 0x25e   :  { %v430_v3 = vadd.f32 %v429_v60, %v428_v63  ;;  %v460_v5 = vadd.f32 %v459_v62, %v458_v1 }
 0x260   :  { %v431_v6 = vpack.c.bf16 %v430_v3, %v430_v3  ;;  %v462_v7 = vmul.f32 %v461_v2, %v460_v5 }
 0x262   :  { %577 = vmatmul.msk.bf16.vlgmr.msrb.gmra.mxu1 %vm396_vm11, %v431_v6  ;;  %v463_v8 = vsel %vm396_vm11, %v462_v7, 0.0 }
 0x263   :  { %464 = vadd.xlane.f32.xlu0 %v463_v8 }
 0x2d6   :  { %v465_v11 = vpop.xlane.xlu0 %464 }
 0x2d7   :  { %v467_v12 = vadd.f32 %v466_v9, %v465_v11 }
 0x2d8   :  { %v319_v13 = vpop.f32.mrf.mxu3 }
 0x2d9   :  { %v320_v14 = vadd.f32 %v319_v13, %v282_v10  ;;  %481 = vrot.lane.b32.xlu2 %v467_v12, %s612_s8 }
 0x2db   :  { %473 = vrot.lane.b32.xlu1 %v320_v14, %s613_s20 }
 0x2df   :  { %v453_v18 = vpop.f32.mrf.mxu1 }
 0x2e0   :  { %v454_v19 = vadd.f32 %v453_v18, %v434_v16  ;;  %v321_v20 = vpop.f32.mrf.mxu3 }
 0x2e1   :  { %485 = vrot.lane.b32.xlu2 %v359_v17, %s614_s21 }
 0x2e2   :  { %469 = vrot.lane.b32.xlu0 %v454_v19, %s615_s22 }
 0x2e3   :  { %477 = vrot.lane.b32.xlu1 %v764_v0, %s616_s2 }
 0x2e7   :  { %v455_v21 = vpop.f32.mrf.mxu1 }
 0x333   :  { %v482_v23 = vpop.permute.xlu2 %481 }
 0x33b   :  { %v486_v29 = vpop.permute.xlu2 %485 }
 0x34d   :  { %v474_v22 = vpop.permute.xlu1 %473 }
 0x354   :  { %v470_v24 = vpop.permute.xlu0 %469 }
 0x355   :  { %v488_v26 = vsel %vm54_vm0, %v706_v56, %v470_v24  ;;  %v478_v42 = vpop.permute.xlu1 %477 }
 0x356   :  { %v489_v27 = vsel %vm75_vm2, %v488_v26, %v474_v22 }
 0x357   :  { %v491_v28 = vsel %vm490_vm4, %v489_v27, %v478_v42 }
 0x358   :  { %v493_v30 = vsel %vm492_vm5, %v491_v28, %v482_v23 }
 0x359   :  { %v495_v31 = vsel %vm494_vm6, %v493_v30, %v486_v29 }
 0x35a   :  { %v497_v32 = vsel %vm496_vm7, %v495_v31, 0.0 }
 0x35b   :  { %498 = vst [vmem:[%s805_s9] sm:$0xff] %v497_v32 }

</bundles_post_ra>
